<compile_context>
chip_gen: v7x
topology: tpu7x:2x2x1
jax: 0.10.0
libtpu: 0.0.40
codegen_flags: <defaults>
</compile_context>

<pallas_src>
import jax
import jax.numpy as jnp
from jax.experimental import pallas as pl
from jax.experimental.pallas import tpu as pltpu

_LANES = 128        # padded feature width (100 -> 128)
_TB_TARGET = 4096   # batch-tile rows; ~4 MiB double-buffered X tile, safe on all gens


def _round_up(x, m):
    return ((x + m - 1) // m) * m


# ----------------------------- Pallas kernel ---------------------------------
def _net_head_kernel(x_ref, w_ref, b_ref, logits_ref, cls_ref, probs_ref):
    x = x_ref[...]          # (TB, 128) f32, features on lanes
    w = w_ref[...]          # (2, 128)  f32, torch (out, in) layout, zero-padded cols
    b = b_ref[...]          # (2, 1)    f32

    # logits^T = W @ X^T : contract the 128-feature axis of both operands -> (2, TB).
    # Batch sits on lanes, so every store below is lane-dense.
    logits = jax.lax.dot_general(
        w, x, (((1,), (1,)), ((), ())),
        preferred_element_type=jnp.float32) + b           # (2, TB)
    logits_ref[...] = logits

    # argmax over the 2 classes (strict '>': tie -> class 0 = first max, as in torch)
    cls_ref[...] = (logits[1:2, :] > logits[0:1, :]).astype(jnp.int32)   # (1, TB)

    # numerically-stable softmax over the class axis (axis 0)
    m = jnp.maximum(logits[0:1, :], logits[1:2, :])        # (1, TB)
    e = jnp.exp(logits - m)                                # (2, TB)
    s = e[0:1, :] + e[1:2, :]                              # (1, TB)
    probs_ref[...] = e * pl.reciprocal(s, approx=True)     # EUP slot; ~1e-3 rel err


def net_head(x_padded, w2, b2, n_valid):
    """x_padded: (BP, 128) f32 padded features (BP multiple of the tile);
    w2: (2, 128) f32; b2: (2, 1) f32.

    Returns transposed results sliced to n_valid rows:
    logits_T (2, B), cls_T (1, B) int32, probs_T (2, B).
    """
    bp = x_padded.shape[0]
    tb = min(bp, _TB_TARGET)

    logits_t, cls_t, probs_t = pl.pallas_call(
        _net_head_kernel,
        out_shape=(
            jax.ShapeDtypeStruct((2, bp), jnp.float32),   # logits^T
            jax.ShapeDtypeStruct((1, bp), jnp.int32),     # target_classes^T
            jax.ShapeDtypeStruct((2, bp), jnp.float32),   # probabilities^T
        ),
        grid=(bp // tb,),
        in_specs=[
            pl.BlockSpec((tb, _LANES), lambda i: (i, 0)),   # X batch tile (pipelined)
            pl.BlockSpec((2, _LANES), lambda i: (0, 0)),    # W (resident)
            pl.BlockSpec((2, 1), lambda i: (0, 0)),         # bias (resident)
        ],
        out_specs=(
            pl.BlockSpec((2, tb), lambda i: (0, i)),        # lane-dense outputs
            pl.BlockSpec((1, tb), lambda i: (0, i)),
            pl.BlockSpec((2, tb), lambda i: (0, i)),
        ),
        compiler_params=pltpu.CompilerParams(
            dimension_semantics=("parallel",)),
    )(x_padded, w2, b2)
    return logits_t[:, :n_valid], cls_t[:, :n_valid], probs_t[:, :n_valid]


# ------------------------------ Model wrapper ---------------------------------
def init_params(key):
    k_emb, k_w, k_b = jax.random.split(key, 3)
    # nn.Embedding default init: N(0, 1)
    embedding = jax.random.normal(k_emb, (1000, 8), dtype=jnp.float32)
    # nn.Linear(100, 2) default init: U(-1/sqrt(100), 1/sqrt(100)); torch layout (out, in)
    bound = 1.0 / jnp.sqrt(100.0)
    w = jax.random.uniform(k_w, (2, 100), jnp.float32, -bound, bound)
    b = jax.random.uniform(k_b, (2,), jnp.float32, -bound, bound)
    w2 = jnp.pad(w, ((0, 0), (0, _LANES - 100)))   # zero-pad feature axis -> exact
    b2 = b.reshape(2, 1)
    return embedding, w2, b2


def net_forward(params, x_wide, x_deep, x_dense):
    embedding, w2, b2 = params
    B = x_wide.shape[0]

    # Embedding lookups + reshape + concat (layout glue, plain JAX/XLA).
    wide = jnp.take(embedding, x_wide.astype(jnp.int32), axis=0).reshape(B, 64)
    deep = jnp.take(embedding, x_deep.astype(jnp.int32), axis=0).reshape(B, 32)
    X = jnp.concatenate([wide, deep, x_dense.astype(jnp.float32)], axis=1)  # (B, 100)

    # Single pad handles both batch (to tile multiple) and feature (100 -> 128) axes.
    if B <= _TB_TARGET:
        bp = max(8, _round_up(B, 8))
    else:
        bp = _round_up(B, _TB_TARGET)
    X = jnp.pad(X, ((0, bp - B), (0, _LANES - 100)))   # zero rows -> logits = bias, no NaNs

    logits_t, cls_t, probs_t = net_head(X, w2, b2, B)
    return {
        "logits": logits_t.T,             # (B, 2)
        "target_classes": cls_t.T,        # (B, 1) int32
        "probabilites": probs_t.T,        # (B, 2)  (key typo preserved from torch module)
    }


# --------------------------------- Main ---------------------------------------
if __name__ == "__main__":
    key = jax.random.PRNGKey(0)
    k_params, k_wide, k_deep, k_dense = jax.random.split(key, 4)

    params = init_params(k_params)
    embedding, w2, b2 = params

    B = 2
    x_wide = jax.random.randint(k_wide, (B, 8), 0, 1000, dtype=jnp.int32)
    x_deep = jax.random.randint(k_deep, (B, 4), 0, 1000, dtype=jnp.int32)
    x_dense = jax.random.normal(k_dense, (B, 4), dtype=jnp.float32)

    fwd = jax.jit(net_forward)
    out = fwd(params, x_wide, x_deep, x_dense)
    jax.block_until_ready(out)

    # Shape checks
    assert out["logits"].shape == (B, 2)
    assert out["target_classes"].shape == (B, 1)
    assert out["probabilites"].shape == (B, 2)

    # Pure-JAX reference check
    wide_r = jnp.take(embedding, x_wide, axis=0).reshape(B, 64)
    deep_r = jnp.take(embedding, x_deep, axis=0).reshape(B, 32)
    X_r = jnp.concatenate([wide_r, deep_r, x_dense], axis=1)          # (B, 100)
    logits_r = X_r @ w2[:, :100].T + b2.reshape(1, 2)                 # (B, 2)
    probs_r = jax.nn.softmax(logits_r, axis=1)
    cls_r = jnp.argmax(logits_r, axis=1, keepdims=True).astype(jnp.int32)

    assert jnp.allclose(out["logits"], logits_r, atol=1e-5, rtol=1e-5)
    assert jnp.allclose(out["probabilites"], probs_r, atol=5e-3, rtol=5e-3)  # approx recip
    assert jnp.array_equal(out["target_classes"], cls_r)

    print("KERNEL_OK")
</pallas_src>

<mosaic_0001>
module attributes {stable_mosaic.version = 11 : i64} {
  func.func @_net_head_kernel(%arg0: i32, %arg1: memref<8x128xf32, #tpu.memory_space<vmem>>, %arg2: memref<2x128xf32, #tpu.memory_space<vmem>>, %arg3: memref<2x1xf32, #tpu.memory_space<vmem>>, %arg4: memref<2x8xf32, #tpu.memory_space<vmem>>, %arg5: memref<1x8xi32, #tpu.memory_space<vmem>>, %arg6: memref<2x8xf32, #tpu.memory_space<vmem>>) attributes {dimension_semantics = [#tpu.dimension_semantics<parallel>], iteration_bounds = array<i64: 1>, scalar_prefetch = 0 : i64, scratch_operands = 0 : i64, tpu.core_type = #tpu.core_type<tc>, window_params = [{transform_indices = @transform_0, window_bounds = array<i64: 8, 128>}, {pipeline_mode = #tpu.pipeline_mode<synchronous>, transform_indices = @transform_1, window_bounds = array<i64: 2, 128>}, {pipeline_mode = #tpu.pipeline_mode<synchronous>, transform_indices = @transform_2, window_bounds = array<i64: 2, 1>}, {transform_indices = @transform_3, window_bounds = array<i64: 2, 8>}, {transform_indices = @transform_4, window_bounds = array<i64: 1, 8>}, {transform_indices = @transform_5, window_bounds = array<i64: 2, 8>}]} {
    %c0 = arith.constant 0 : index
    %c0_0 = arith.constant 0 : index
    %0 = vector.load %arg1[%c0, %c0_0] : memref<8x128xf32, #tpu.memory_space<vmem>>, vector<8x128xf32>
    %c0_1 = arith.constant 0 : index
    %c0_2 = arith.constant 0 : index
    %1 = vector.load %arg2[%c0_1, %c0_2] : memref<2x128xf32, #tpu.memory_space<vmem>>, vector<2x128xf32>
    %c0_3 = arith.constant 0 : index
    %c0_4 = arith.constant 0 : index
    %2 = vector.load %arg3[%c0_3, %c0_4] : memref<2x1xf32, #tpu.memory_space<vmem>>, vector<2x1xf32>
    %cst = arith.constant dense<0.000000e+00> : vector<2x8xf32>
    %3 = tpu.matmul %1, %0, %cst {dimension_numbers = #tpu.dot_dimension_numbers<[1], [1], [0], [0], [0, 0, 1, 0], [], []>} : vector<2x128xf32>, vector<8x128xf32>, vector<2x8xf32> -> vector<2x8xf32>
    %4 = vector.broadcast %2 : vector<2x1xf32> to vector<2x8xf32>
    %5 = arith.addf %3, %4 : vector<2x8xf32>
    %c0_5 = arith.constant 0 : index
    %c0_6 = arith.constant 0 : index
    %6 = vector.load %arg4[%c0_5, %c0_6] : memref<2x8xf32, #tpu.memory_space<vmem>>, vector<2x8xf32>
    tpu.vector_store %arg4[%c0_5, %c0_6], %5 {strides = array<i32>} : memref<2x8xf32, #tpu.memory_space<vmem>>, vector<2x8xf32>,
    %7 = vector.extract_strided_slice %5 {offsets = [1, 0], sizes = [1, 8], strides = [1, 1]} : vector<2x8xf32> to vector<1x8xf32>
    %8 = vector.extract_strided_slice %5 {offsets = [0, 0], sizes = [1, 8], strides = [1, 1]} : vector<2x8xf32> to vector<1x8xf32>
    %9 = arith.cmpf ogt, %7, %8 : vector<1x8xf32>
    %10 = arith.extui %9 : vector<1x8xi1> to vector<1x8xi32>
    %c0_7 = arith.constant 0 : index
    %c0_8 = arith.constant 0 : index
    %11 = vector.load %arg5[%c0_7, %c0_8] : memref<1x8xi32, #tpu.memory_space<vmem>>, vector<1x8xi32>
    tpu.vector_store %arg5[%c0_7, %c0_8], %10 {strides = array<i32>} : memref<1x8xi32, #tpu.memory_space<vmem>>, vector<1x8xi32>,
    %12 = vector.extract_strided_slice %5 {offsets = [0, 0], sizes = [1, 8], strides = [1, 1]} : vector<2x8xf32> to vector<1x8xf32>
    %13 = vector.extract_strided_slice %5 {offsets = [1, 0], sizes = [1, 8], strides = [1, 1]} : vector<2x8xf32> to vector<1x8xf32>
    %14 = arith.maximumf %12, %13 : vector<1x8xf32>
    %15 = vector.broadcast %14 : vector<1x8xf32> to vector<2x8xf32>
    %16 = arith.subf %5, %15 : vector<2x8xf32>
    %17 = math.exp %16 : vector<2x8xf32>
    %18 = vector.extract_strided_slice %17 {offsets = [0, 0], sizes = [1, 8], strides = [1, 1]} : vector<2x8xf32> to vector<1x8xf32>
    %19 = vector.extract_strided_slice %17 {offsets = [1, 0], sizes = [1, 8], strides = [1, 1]} : vector<2x8xf32> to vector<1x8xf32>
    %20 = arith.addf %18, %19 : vector<1x8xf32>
    %21 = tpu.reciprocal %20 {approx = true} : vector<1x8xf32> -> vector<1x8xf32>
    %22 = vector.broadcast %21 : vector<1x8xf32> to vector<2x8xf32>
    %23 = arith.mulf %17, %22 : vector<2x8xf32>
    %c0_9 = arith.constant 0 : index
    %c0_10 = arith.constant 0 : index
    %24 = vector.load %arg6[%c0_9, %c0_10] : memref<2x8xf32, #tpu.memory_space<vmem>>, vector<2x8xf32>
    tpu.vector_store %arg6[%c0_9, %c0_10], %23 {strides = array<i32>} : memref<2x8xf32, #tpu.memory_space<vmem>>, vector<2x8xf32>,
    return
  }
  func.func @transform_0(%arg0: i32) -> (i32, i32) {
    %c0_i32 = arith.constant 0 : i32
    %c0_i32_0 = arith.constant 0 : i32
    return %arg0, %c0_i32 : i32, i32
  }
  func.func @transform_1(%arg0: i32) -> (i32, i32) {
    %c0_i32 = arith.constant 0 : i32
    %c0_i32_0 = arith.constant 0 : i32
    %c0_i32_1 = arith.constant 0 : i32
    return %c0_i32, %c0_i32_0 : i32, i32
  }
  func.func @transform_2(%arg0: i32) -> (i32, i32) {
    %c0_i32 = arith.constant 0 : i32
    %c0_i32_0 = arith.constant 0 : i32
    %c0_i32_1 = arith.constant 0 : i32
    return %c0_i32, %c0_i32_0 : i32, i32
  }
  func.func @transform_3(%arg0: i32) -> (i32, i32) {
    %c0_i32 = arith.constant 0 : i32
    %c0_i32_0 = arith.constant 0 : i32
    return %c0_i32, %arg0 : i32, i32
  }
  func.func @transform_4(%arg0: i32) -> (i32, i32) {
    %c0_i32 = arith.constant 0 : i32
    %c0_i32_0 = arith.constant 0 : i32
    return %c0_i32, %arg0 : i32, i32
  }
  func.func @transform_5(%arg0: i32) -> (i32, i32) {
    %c0_i32 = arith.constant 0 : i32
    %c0_i32_0 = arith.constant 0 : i32
    return %c0_i32, %arg0 : i32, i32
  }
}

</mosaic_0001>

<bundles_post_ra>
// kernel: net_forward.1
= control target key start
LH: loop header
LB: loop body
LE: loop exit
PB: predicated region body
PF: predicated region fallthrough
CT: control target
= control target key end

     0   :  { %v152_v0 = vmov 0.0   ;;  %vm153_vm0 = vmmov 0   ;;  %v154_v4 = vmov 0   ;;  %v107_v5 = vlaneseq  ;;  %s205_s0 = inlined_call_operand.vmem [shape: f32[8,128], index: 0, kind: input, shape index: {}]   ;;  %s206_s1 = inlined_call_operand.vmem [shape: f32[2,128], index: 1, kind: input, shape index: {}]   ;;  %s207_s2 = inlined_call_operand.vmem [shape: f32[2,1], index: 2, kind: input, shape index: {}]   ;;  %s208_s3 = inlined_call_operand.vmem [shape: f32[2,8], index: 3, kind: output, shape index: {0}]   ;;  %s209_s4 = inlined_call_operand.vmem [shape: s32[1,8], index: 4, kind: output, shape index: {1}]   ;;  %s210_s5 = inlined_call_operand.vmem [shape: f32[2,8], index: 5, kind: output, shape index: {2}]  }
   0x1   :  { %139 = vmatprep.subr.mxu0 %v152_v0  ;;  %v17_v1 = vld [vmem:[%s205_s0] sm:$0xff]  ;;  %141 = vmatprep.mubr.msk.f32.mxu0 %vm153_vm0, %v152_v0  ;;  %vm95_vm1 = vcmask 58368   ;;  %vm102_vm2 = vcmask 58369  }
   0x2   :  { %v19_v2 = vld [vmem:[%s207_s2] sm:$0x3]  ;;  %140 = vmatpush3.xpose.msra.mxu0 %v17_v1  ;;  %147 = vset.pattern.permute.xlu0 %v154_v4  ;;  %v108_v7 = vshrl.u32 %v107_v5, 7 }
   0x3   :  { %v18_v3 = vld [vmem:[%s206_s1] sm:$0x3]  ;;  %22 = vperm.xlu0 %147, %v19_v2  }
   0x4   :  { %v109_v13 = vsub.s32 0, %v108_v7 }
   0x5   :  { %142 = vmatmul.mubr.f32.vlgmr.msra.gmra.mrb[0].mxu0 %v18_v3 }
  0x82   :  { %v23_v6 = vpop.permute.xlu0 %22 }
  0xd8   :  { %v91_v8 = vpop.f32.mrb[0].mxu0 }
  0xd9   :  { %v92_v9 = vadd.f32 %v91_v8, %v23_v6  ;;  %v143_v10 = vpop.f32.mrb[1].mxu0 }
  0xdb   :  { %96 = vst.msk [vmem:[%s208_s3] sm:$0x3] %vm95_vm1, %v92_v9  ;;  %v98_v11 = vrot.slane %v92_v9, 7  ;;  %v104_v12 = vrot.slane %v92_v9, 1 }
  0xdd   :  { %vm100_vm3 = vcmp.gt.f32.partialorder %v92_v9, %v98_v11  ;;  %v106_v14 = vmax.f32 %v92_v9, %v104_v12 }
  0xde   :  { %v101_v15 = vsel %vm100_vm3, 1, %v154_v4 }
  0xdf   :  { %103 = vst.msk [vmem:[%s209_s4 - $0x1] sm:$0x2] %vm102_vm2, %v101_v15  ;;  %v110_v16 = vrot.slane %v106_v14, %v109_v13 }
  0xe1   :  { %v111_v17 = vsub.f32 %v92_v9, %v110_v16 }
  0xe3   :  { %v112_v18 = vmul.f32 1.442695, %v111_v17 }
  0xe5   :  { %148 = vpow2.f32 %v112_v18 }
  0xef   :  { %v149_v19 = vpop.eup %148 }
  0xf0   :  { %v115_v20 = vrot.slane %v149_v19, 1 }
  0xf2   :  { %v117_v21 = vadd.f32 %v149_v19, %v115_v20 }
  0xf4   :  { %150 = vrcp.f32 %v117_v21 }
  0xfe   :  { %v151_v22 = vpop.eup %150 }
  0xff   :  { %v122_v23 = vrot.slane %v151_v22, %v109_v13 }
 0x101   :  { %v123_v24 = vmul.f32 %v149_v19, %v122_v23 }
 0x103   :  { %124 = vst.msk [vmem:[%s210_s5] sm:$0x3] %vm95_vm1, %v123_v24 }

</bundles_post_ra>
